<compile_context>
chip_gen: v7x
topology: tpu7x:2x2x1
jax: 0.10.0
libtpu: 0.0.40
codegen_flags: <defaults>
</compile_context>

<pallas_src>
import functools

import jax
import jax.numpy as jnp
from jax.experimental import pallas as pl
from jax.experimental.pallas import tpu as pltpu

IGNORE_INDEX = -100
_LANE = 128


def _focal_loss_kernel(logits_ref, ta_ref, row_loss_ref, *,
                       gamma, ignore_index, n_rows, block_rows):
    """One row-tile of focal loss; every grid step is independent."""
    i = pl.program_id(0)

    logits = logits_ref[...].astype(jnp.float32)           # (TM, C)
    ta = ta_ref[...]                                        # (TM, 2) f32
    tgt = ta[:, 0:1].astype(jnp.int32)                      # (TM, 1) exact for small ints
    alpha_t = ta[:, 1:2]                                    # (TM, 1)

    # Row validity: mask rows of the (possibly partial) last tile beyond N and
    # rows whose target is the ignore_index.
    row_idx = i * block_rows + jax.lax.broadcasted_iota(jnp.int32, tgt.shape, 0)
    valid = (row_idx < n_rows) & (tgt != ignore_index)      # (TM, 1) bool

    # Target logit via select (no float one-hot; robust to -inf-masked logits).
    # NOTE: targets outside [0, C) that are not ignore_index silently give a
    # zero-loss row (PyTorch would raise); documented behavior.
    col = jax.lax.broadcasted_iota(jnp.int32, logits.shape, 1)
    logit_t = jnp.sum(jnp.where(col == tgt, logits, 0.0), axis=-1, keepdims=True)

    # Numerically-stable log-sum-exp: single full-width pass over the class axis.
    m = jnp.max(logits, axis=-1, keepdims=True)             # (TM, 1)
    sumexp = jnp.sum(jnp.exp(logits - m), axis=-1, keepdims=True)
    ce = (jnp.log(sumexp) + m) - logit_t                    # (TM, 1)

    # p_t = softmax prob of the true class = exp(-ce): per-row EUP op instead
    # of a second masked (TM, C) reduction + divide.
    p = jnp.exp(-ce)
    one_minus_p = jnp.maximum(1.0 - p, 0.0)
    if gamma == 0.0:
        fw = jnp.ones_like(one_minus_p)
    elif gamma == 1.0:
        fw = one_minus_p
    elif gamma == 2.0:
        fw = one_minus_p * one_minus_p
    else:
        fw = jnp.power(one_minus_p, gamma)

    row_loss_ref[...] = jnp.where(valid, alpha_t * fw * ce, 0.0)


def _working_set_cap_bytes():
    """Per-generation VMEM working-set target for one pipelined row tile."""
    try:
        kind = jax.devices()[0].device_kind.lower()
    except Exception:
        kind = ""
    if "v5 lite" in kind or "v5e" in kind or "v5lite" in kind:
        return 28 << 20   # v5e: HBM-bound; ~5-6 MiB logits tiles already stream well
    return 40 << 20       # v6e / v7x: larger tiles amortize the ~0.35 us/step overhead


def focal_loss(logits, targets, alpha=None, gamma=2.0, reduction="mean",
               ignore_index=IGNORE_INDEX, block_rows=None):
    """logits: (N, C) float, targets: (N,) int, alpha: None | scalar | (C,) array."""
    n, c = logits.shape
    targets = targets.astype(jnp.int32)

    # alpha_t gathered host-side (N floats -- essentially free). Mirrors torch:
    # None -> 1, scalar -> broadcast, tensor -> gather along targets.
    valid = targets != ignore_index
    t_safe = jnp.where(valid, jnp.clip(targets, 0, c - 1), 0)
    if alpha is None:
        alpha_t = jnp.ones((n,), jnp.float32)
    elif isinstance(alpha, (int, float)):
        alpha_t = jnp.full((n,), float(alpha), jnp.float32)
    else:
        alpha_t = jnp.asarray(alpha, jnp.float32)[t_safe]

    # Pack targets + alpha_t into one (N, 2) f32 side input -> one tiny per-step
    # DMA instead of two (int targets are exactly representable in f32 here).
    ta = jnp.stack([targets.astype(jnp.float32), alpha_t], axis=1)

    itemsize = jnp.dtype(logits.dtype).itemsize
    sub = {4: 8, 2: 16, 1: 32}.get(itemsize, 8)             # sublane packing
    padded_c = ((c + _LANE - 1) // _LANE) * _LANE           # VMEM lane padding

    # VMEM working-set model per tile row: 2x (double-buffered) native-dtype
    # logits block + ~3 live full-width f32 temporaries (upcast / exp / select)
    # + lane-padded packed side input and loss output (double-buffered).
    per_row_vmem = 2 * padded_c * itemsize + 3 * padded_c * 4 + 4 * _LANE * 4
    cap = _working_set_cap_bytes()

    if sub * per_row_vmem > cap:
        # TODO(synk): vocab-scale C needs a class-axis grid dimension with an
        # online logsumexp (carry m / sumexp / logit_t in VMEM scratch,
        # finalize on the last class step with pl.when); not implemented here.
        raise NotImplementedError(
            f"num_classes={c} too large for a single class-axis tile in VMEM")

    if block_rows is None:
        tm = (cap // per_row_vmem) // sub * sub
    else:
        tm = (int(block_rows) // sub) * sub
    tm = max(sub, min(tm, ((n + sub - 1) // sub) * sub))    # no bigger than all rows
    grid = (pl.cdiv(n, tm),)

    kernel = functools.partial(_focal_loss_kernel, gamma=float(gamma),
                               ignore_index=int(ignore_index), n_rows=n,
                               block_rows=tm)

    row_loss = pl.pallas_call(
        kernel,
        out_shape=jax.ShapeDtypeStruct((n, 1), jnp.float32),
        grid=grid,
        in_specs=[
            pl.BlockSpec((tm, c), lambda i: (i, 0)),        # logits, native dtype
            pl.BlockSpec((tm, 2), lambda i: (i, 0)),        # packed targets / alpha_t
        ],
        out_specs=pl.BlockSpec((tm, 1), lambda i: (i, 0)),
        compiler_params=pltpu.CompilerParams(
            dimension_semantics=("parallel",),
            vmem_limit_bytes=int(cap + (8 << 20))),
    )(logits, ta)

    if reduction == "mean":
        # torch module: mean over ALL N rows (ignored rows contribute 0 but count).
        return jnp.sum(row_loss) / n
    elif reduction == "sum":
        return jnp.sum(row_loss)
    else:  # 'none'
        return row_loss[:, 0]


def _reference_focal_loss(logits, targets, alpha, gamma, ignore_index, reduction):
    """Pure-JAX reference mirroring the PyTorch module."""
    valid = targets != ignore_index
    t = jnp.where(valid, targets, 0)
    logp = jax.nn.log_softmax(logits.astype(jnp.float32), axis=-1)
    ce = -jnp.take_along_axis(logp, t[:, None], axis=-1)[:, 0]
    ce = jnp.where(valid, ce, 0.0)
    p = jnp.exp(-ce)
    fw = (1.0 - p) ** gamma
    if alpha is None:
        a_t = 1.0
    elif isinstance(alpha, (int, float)):
        a_t = float(alpha)
    else:
        a_t = jnp.asarray(alpha, jnp.float32)[t]
    fl = jnp.where(valid, a_t * fw * ce, 0.0)
    if reduction == "mean":
        return fl.mean()
    if reduction == "sum":
        return fl.sum()
    return fl


if __name__ == "__main__":
    key = jax.random.PRNGKey(0)
    k1, k2, k3, k4, k5, k6 = jax.random.split(key, 6)
    gamma = 2.0

    # Case 1: small aligned shapes, ignore_index + per-class alpha ('mean' / 'none').
    N1, C1 = 8, 4
    alpha1 = jnp.array([0.25, 0.75, 0.5, 1.0], dtype=jnp.float32)
    logits1 = jax.random.normal(k1, (N1, C1), dtype=jnp.float32)
    targets1 = jax.random.randint(k2, (N1,), 0, C1, dtype=jnp.int32)
    targets1 = targets1.at[3].set(IGNORE_INDEX)

    out = jax.block_until_ready(focal_loss(logits1, targets1, alpha1, gamma, "mean"))
    ref = _reference_focal_loss(logits1, targets1, alpha1, gamma, IGNORE_INDEX, "mean")
    assert jnp.allclose(out, ref, rtol=1e-5, atol=1e-5), (out, ref)

    out = jax.block_until_ready(focal_loss(logits1, targets1, alpha1, gamma, "none"))
    ref = _reference_focal_loss(logits1, targets1, alpha1, gamma, IGNORE_INDEX, "none")
    assert jnp.allclose(out, ref, rtol=1e-5, atol=1e-5), (out, ref)

    # Case 2: non-aligned N and C (partial row tile, C not a multiple of 128), 'sum'.
    N2, C2 = 13, 5
    alpha2 = jnp.linspace(0.25, 1.0, C2, dtype=jnp.float32)
    logits2 = jax.random.normal(k3, (N2, C2), dtype=jnp.float32)
    targets2 = jax.random.randint(k4, (N2,), 0, C2, dtype=jnp.int32)
    targets2 = targets2.at[5].set(IGNORE_INDEX)

    out = jax.block_until_ready(focal_loss(logits2, targets2, alpha2, gamma, "sum"))
    ref = _reference_focal_loss(logits2, targets2, alpha2, gamma, IGNORE_INDEX, "sum")
    assert jnp.allclose(out, ref, rtol=1e-5, atol=1e-5), (out, ref)

    # Case 3: multiple row tiles (explicit block_rows), scalar alpha, 'none'.
    N3, C3 = 200, 130
    logits3 = jax.random.normal(k5, (N3, C3), dtype=jnp.float32)
    targets3 = jax.random.randint(k6, (N3,), 0, C3, dtype=jnp.int32)
    targets3 = targets3.at[17].set(IGNORE_INDEX)

    out = jax.block_until_ready(
        focal_loss(logits3, targets3, 0.5, gamma, "none", block_rows=64))
    ref = _reference_focal_loss(logits3, targets3, 0.5, gamma, IGNORE_INDEX, "none")
    assert jnp.allclose(out, ref, rtol=1e-5, atol=1e-5), (out, ref)

    print("KERNEL_OK")
</pallas_src>

<mosaic_0001>
module attributes {stable_mosaic.version = 11 : i64} {
  func.func @_focal_loss_kernel(%arg0: i32, %arg1: memref<8x4xf32, #tpu.memory_space<vmem>>, %arg2: memref<8x2xf32, #tpu.memory_space<vmem>>, %arg3: memref<8x1xf32, #tpu.memory_space<vmem>>) attributes {dimension_semantics = [#tpu.dimension_semantics<parallel>], iteration_bounds = array<i64: 1>, scalar_prefetch = 0 : i64, scratch_operands = 0 : i64, tpu.core_type = #tpu.core_type<tc>, window_params = [{transform_indices = @transform_0, window_bounds = array<i64: 8, 4>}, {transform_indices = @transform_1, window_bounds = array<i64: 8, 2>}, {transform_indices = @transform_2, window_bounds = array<i64: 8, 1>}]} {
    %c0 = arith.constant 0 : index
    %c0_0 = arith.constant 0 : index
    %0 = vector.load %arg1[%c0, %c0_0] : memref<8x4xf32, #tpu.memory_space<vmem>>, vector<8x4xf32>
    %c0_1 = arith.constant 0 : index
    %c0_2 = arith.constant 0 : index
    %1 = vector.load %arg2[%c0_1, %c0_2] : memref<8x2xf32, #tpu.memory_space<vmem>>, vector<8x2xf32>
    %2 = vector.extract_strided_slice %1 {offsets = [0, 0], sizes = [8, 1], strides = [1, 1]} : vector<8x2xf32> to vector<8x1xf32>
    %3 = arith.fptosi %2 : vector<8x1xf32> to vector<8x1xi32>
    %4 = vector.extract_strided_slice %1 {offsets = [0, 1], sizes = [8, 1], strides = [1, 1]} : vector<8x2xf32> to vector<8x1xf32>
    %c8_i32 = arith.constant 8 : i32
    %5 = arith.muli %arg0, %c8_i32 : i32
    %6 = tpu.iota {dimensions = array<i32: 0>} : vector<8x1xi32>
    %7 = vector.broadcast %5 : i32 to vector<8x1xi32>
    %8 = arith.addi %7, %6 : vector<8x1xi32>
    %c8_i32_3 = arith.constant 8 : i32
    %9 = vector.broadcast %c8_i32_3 : i32 to vector<8x1xi32>
    %10 = arith.cmpi slt, %8, %9 : vector<8x1xi32>
    %c-100_i32 = arith.constant -100 : i32
    %11 = vector.broadcast %c-100_i32 : i32 to vector<8x1xi32>
    %12 = arith.cmpi ne, %3, %11 : vector<8x1xi32>
    %13 = arith.andi %10, %12 : vector<8x1xi1>
    %14 = tpu.iota {dimensions = array<i32: 1>} : vector<8x4xi32>
    %15 = vector.broadcast %3 : vector<8x1xi32> to vector<8x4xi32>
    %16 = arith.cmpi eq, %14, %15 : vector<8x4xi32>
    %cst = arith.constant 0.000000e+00 : f32
    %17 = vector.broadcast %cst : f32 to vector<8x4xf32>
    %18 = arith.select %16, %0, %17 : vector<8x4xi1>, vector<8x4xf32>
    %cst_4 = arith.constant dense<0.000000e+00> : vector<8xf32>
    %19 = vector.multi_reduction <add>, %18, %cst_4 [1] : vector<8x4xf32> to vector<8xf32>
    %20 = vector.shape_cast %19 : vector<8xf32> to vector<8x1xf32>
    %cst_5 = arith.constant dense<0xFF800000> : vector<8xf32>
    %21 = vector.multi_reduction <maximumf>, %0, %cst_5 [1] : vector<8x4xf32> to vector<8xf32>
    %22 = vector.shape_cast %21 : vector<8xf32> to vector<8x1xf32>
    %23 = vector.broadcast %22 : vector<8x1xf32> to vector<8x4xf32>
    %24 = arith.subf %0, %23 : vector<8x4xf32>
    %25 = math.exp %24 : vector<8x4xf32>
    %cst_6 = arith.constant dense<0.000000e+00> : vector<8xf32>
    %26 = vector.multi_reduction <add>, %25, %cst_6 [1] : vector<8x4xf32> to vector<8xf32>
    %27 = vector.shape_cast %26 : vector<8xf32> to vector<8x1xf32>
    %28 = math.log %27 : vector<8x1xf32>
    %29 = arith.addf %28, %22 : vector<8x1xf32>
    %30 = arith.subf %29, %20 : vector<8x1xf32>
    %cst_7 = arith.constant 0.000000e+00 : f32
    %31 = vector.broadcast %cst_7 : f32 to vector<8x1xf32>
    %32 = arith.subf %31, %30 : vector<8x1xf32>
    %33 = math.exp %32 : vector<8x1xf32>
    %cst_8 = arith.constant 1.000000e+00 : f32
    %34 = vector.broadcast %cst_8 : f32 to vector<8x1xf32>
    %35 = arith.subf %34, %33 : vector<8x1xf32>
    %cst_9 = arith.constant 0.000000e+00 : f32
    %36 = vector.broadcast %cst_9 : f32 to vector<8x1xf32>
    %37 = arith.maximumf %35, %36 : vector<8x1xf32>
    %38 = arith.mulf %37, %37 : vector<8x1xf32>
    %39 = arith.mulf %4, %38 : vector<8x1xf32>
    %40 = arith.mulf %39, %30 : vector<8x1xf32>
    %cst_10 = arith.constant 0.000000e+00 : f32
    %41 = vector.broadcast %cst_10 : f32 to vector<8x1xf32>
    %42 = arith.select %13, %40, %41 : vector<8x1xi1>, vector<8x1xf32>
    %c0_11 = arith.constant 0 : index
    %c0_12 = arith.constant 0 : index
    %43 = vector.load %arg3[%c0_11, %c0_12] : memref<8x1xf32, #tpu.memory_space<vmem>>, vector<8x1xf32>
    tpu.vector_store %arg3[%c0_11, %c0_12], %42 {strides = array<i32>} : memref<8x1xf32, #tpu.memory_space<vmem>>, vector<8x1xf32>,
    return
  }
  func.func @transform_0(%arg0: i32) -> (i32, i32) {
    %c0_i32 = arith.constant 0 : i32
    %c0_i32_0 = arith.constant 0 : i32
    return %arg0, %c0_i32 : i32, i32
  }
  func.func @transform_1(%arg0: i32) -> (i32, i32) {
    %c0_i32 = arith.constant 0 : i32
    %c0_i32_0 = arith.constant 0 : i32
    return %arg0, %c0_i32 : i32, i32
  }
  func.func @transform_2(%arg0: i32) -> (i32, i32) {
    %c0_i32 = arith.constant 0 : i32
    %c0_i32_0 = arith.constant 0 : i32
    return %arg0, %c0_i32 : i32, i32
  }
}

</mosaic_0001>

<bundles_post_ra>
// kernel: tpu_custom_call.1
= control target key start
LH: loop header
LB: loop body
LE: loop exit
PB: predicated region body
PF: predicated region fallthrough
CT: control target
= control target key end

     0   :  { %vm29_vm0 = vcmask 31744   ;;  %v76_v1 = vmov 0   ;;  %v22_v9 = vlaneseq  ;;  %vm59_vm3 = vcmask 7168   ;;  %s105_s0 = inlined_call_operand.vmem [shape: f32[8,4], index: 0, kind: input, shape index: {}]   ;;  %s106_s1 = inlined_call_operand.vmem [shape: f32[8,2], index: 1, kind: input, shape index: {}]   ;;  %s107_s2 = inlined_call_operand.vmem [shape: f32[8,1], index: 2, kind: output, shape index: {}]  }
   0x1   :  { %v11_v0 = vld [vmem:[%s105_s0] sm:$0xff]  ;;  %69 = vset.pattern.permute.xlu0 %v76_v1  ;;  %s77_s0 = smov 127  }
   0x2   :  { %v33_v2 = vsel %vm29_vm0, %v11_v0, -inf  ;;  %v12_v3 = vld [vmem:[%s106_s1] sm:$0xff]  ;;  %v23_v10 = vand.u32 127, %v22_v9 }
   0x3   :  { %34 = vmax.xlane.f32.xlu0 %v33_v2  ;;  %v65_v4 = vtrunc.f32 %v12_v3 }
   0x5   :  { %v66_v5 = vcvt.f32.s32 %v65_v4 }
   0x7   :  { %vm20_vm2 = vcmp.ne.s32.totalorder %v66_v5, 4294967196 }
  0x19   :  { %25 = vperm.xlu0 %69, %v66_v5  }
  0x90   :  { %v35_v6 = vpop.xlane.xlu0 %34 }
  0x91   :  { %v36_v7 = vsub.f32 %v11_v0, %v35_v6 }
  0x93   :  { %v37_v8 = vmul.f32 1.442695, %v36_v7 }
  0x95   :  { %70 = vpow2.f32 %v37_v8 }
  0x98   :  { %v26_v11 = vpop.permute.xlu0 %25 }
  0x99   :  { %vm27_vm1 = vcmp.eq.s32.totalorder %v23_v10, %v26_v11 }
  0x9a   :  { %v28_v13 = vsel %vm27_vm1, %v11_v0, 0.0 }
  0x9b   :  { %v30_v15 = vsel %vm29_vm0, %v28_v13, 0.0 }
  0x9f   :  { %v71_v12 = vpop.eup %70 }
  0xa0   :  { %v39_v14 = vsel %vm29_vm0, %v71_v12, 0.0 }
  0xa1   :  { %40 = vadd.xlane.f32.xlu1 %v39_v14 }
  0xa5   :  { %31 = vadd.xlane.f32.xlu1 %v30_v15 }
 0x12e   :  { %v41_v16 = vpop.xlane.xlu1 %40 }
 0x12f   :  { %72 = vlog2.f32 %v41_v16 }
 0x132   :  { %v32_v19 = vpop.xlane.xlu1 %31 }
 0x139   :  { %v73_v17 = vpop.eup %72 }
 0x13a   :  { %v43_v18 = vmul.f32 0.6931472, %v73_v17 }
 0x13c   :  { %v44_v20 = vadd.f32 %v43_v18, %v35_v6 }
 0x13e   :  { %v45_v21 = vsub.f32 %v44_v20, %v32_v19 }
 0x140   :  { %v46_v22 = vsub.f32 0.0, %v45_v21 }
 0x142   :  { %v47_v23 = vmul.f32 1.442695, %v46_v22 }
 0x144   :  { %74 = vpow2.f32 %v47_v23 }
 0x14e   :  { %v75_v24 = vpop.eup %74 }
 0x14f   :  { %v49_v25 = vsub.f32 1.0, %v75_v24 }
 0x151   :  { %v50_v26 = vmax.f32 %v49_v25, 0.0 }
 0x153   :  { %v51_v27 = vmul.f32 %v50_v26, %v50_v26 }
 0x155   :  { %v52_v28 = vmul.f32 %v51_v27, %v12_v3 }
 0x157   :  { %v53_v29 = vmul.f32 %v52_v28, %v45_v21 }
 0x159   :  { %55 = vrot.lane.b32.xlu1 %v53_v29, %s77_s0 }
 0x1cb   :  { %v56_v30 = vpop.permute.xlu1 %55 }
 0x1cc   :  { %v58_v31 = vsel %vm20_vm2, %v56_v30, 0.0 }
 0x1cd   :  { %60 = vst.msk [vmem:[%s107_s2] sm:$0xff] %vm59_vm3, %v58_v31 }

</bundles_post_ra>
